<compile_context>
chip_gen: v6e
topology: v6e:2x2x1
jax: 0.10.0
libtpu: 0.0.40
codegen_flags: <defaults>
</compile_context>

<pallas_src>
import functools

import jax
import jax.numpy as jnp
from jax.experimental import pallas as pl
from jax.experimental.pallas import tpu as pltpu


def _round_up(x, m):
    return ((x + m - 1) // m) * m


def _supcon_kernel(*refs, use_labels, temperature, base_temperature,
                   num_anchors, num_contrast, block_m, block_c):
    if use_labels:
        (a_ref, ct_ref, lab_a_ref, lab_c_ref, cnt_ref, out_ref,
         mx_ref, mn_ref, esum_ref, psum_ref) = refs
    else:
        (a_ref, ct_ref, mask_ref, cnt_ref, out_ref,
         mx_ref, mn_ref, esum_ref, psum_ref) = refs

    i = pl.program_id(0)            # anchor-row tile
    p = pl.program_id(1)            # phase: 0 = row max/min, 1 = fused sums
    c = pl.program_id(2)            # contrast-column chunk
    n_chunks = pl.num_programs(2)

    # [block_m, block_c] scores on the MXU.  Contrast arrives pre-transposed
    # ([D, Nc]) so this is a plain [M,K]x[K,N] contraction (no in-kernel
    # transpose) and the large Nc dimension stays lane-dense.  The reference's
    # 1/temperature factor cancels under its (x-min)/(max-min) row rescale, so
    # the full-tile multiply is dropped entirely.
    s = jax.lax.dot_general(a_ref[...], ct_ref[...], (((1,), (0,)), ((), ())),
                            preferred_element_type=jnp.float32)

    col_global = jax.lax.broadcasted_iota(jnp.int32, s.shape, 1) + c * block_c
    row_global = jax.lax.broadcasted_iota(jnp.int32, s.shape, 0) + i * block_m
    col_valid = col_global < num_contrast          # drop zero-padded columns

    @pl.when(jnp.logical_and(p == 0, c == 0))
    def _init():
        mx_ref[...] = jnp.full_like(mx_ref, -jnp.inf)
        mn_ref[...] = jnp.full_like(mn_ref, jnp.inf)
        esum_ref[...] = jnp.zeros_like(esum_ref)
        psum_ref[...] = jnp.zeros_like(psum_ref)

    @pl.when(p == 0)
    def _row_extrema():
        mx_ref[...] = jnp.maximum(
            mx_ref[...],
            jnp.max(jnp.where(col_valid, s, -jnp.inf), axis=-1, keepdims=True))
        mn_ref[...] = jnp.minimum(
            mn_ref[...],
            jnp.min(jnp.where(col_valid, s, jnp.inf), axis=-1, keepdims=True))

    @pl.when(p == 1)
    def _accumulate():
        # Row-wise (x - min)/(max - min) rescale exactly as in the reference;
        # exact per-row reciprocal ([block_m, 1] only, cost is negligible).
        inv_rng = 1.0 / (mx_ref[...] - mn_ref[...])
        logits = (s - mn_ref[...]) * inv_rng
        # Self-column / padded-column exclusion kept boolean and folded into
        # the reductions: no float mask tiles are materialized.
        lmask = jnp.logical_and(col_valid, col_global != row_global)
        esum_ref[...] += jnp.sum(jnp.where(lmask, jnp.exp(logits), 0.0),
                                 axis=-1, keepdims=True)
        if use_labels:
            pos = jnp.logical_and(lmask, lab_a_ref[...] == lab_c_ref[...])
            psum_ref[...] += jnp.sum(jnp.where(pos, logits, 0.0),
                                     axis=-1, keepdims=True)
        else:
            # Explicit (possibly non-binary / asymmetric) mask path: keep the
            # actual streamed bf16 mask values to match the reference multiply.
            psum_ref[...] += jnp.sum(
                jnp.where(lmask, logits, 0.0) * mask_ref[...].astype(jnp.float32),
                axis=-1, keepdims=True)

    @pl.when(jnp.logical_and(p == 1, c == n_chunks - 1))
    def _finalize():
        cnt = cnt_ref[...]                                   # [block_m, 1]
        safe_cnt = jnp.where(cnt < 1e-6, jnp.float32(1.0), cnt)
        log_denom = jnp.log(esum_ref[...])
        mean_log_prob_pos = (psum_ref[...] - cnt * log_denom) / safe_cnt
        loss = jnp.float32(-(temperature / base_temperature)) * mean_log_prob_pos
        rid = jax.lax.broadcasted_iota(jnp.int32, (block_m, 1), 0) + i * block_m
        # Zero the zero-padded anchor rows (NaN-safe: where is a select), and
        # emit a lane-dense per-tile partial sum; the mean over the true Na
        # anchors happens in the wrapper.
        tile_sum = jnp.sum(jnp.where(rid < num_anchors, loss, 0.0))
        out_ref[...] = jnp.full((1, 1, 128), tile_sum, dtype=jnp.float32)


def supcon_loss(features, labels=None, mask=None, *, temperature=0.07,
                contrast_mode='all', base_temperature=0.07,
                block_m=None, block_c=512):
    """JAX/Pallas equivalent of SupConLoss.forward (returns a scalar loss)."""
    features = jnp.asarray(features)
    if features.ndim < 3:
        raise ValueError('`features` needs to be [bsz, n_views, ...], '
                         'at least 3 dimensions are required')
    features = features.reshape(features.shape[0], features.shape[1], -1)
    bsz, n_views, dim = features.shape

    if labels is not None and mask is not None:
        raise ValueError('Cannot define both `labels` and `mask`')

    contrast_count = n_views
    # torch.cat(torch.unbind(features, dim=1), dim=0): view-major stacking.
    contrast_feature = jnp.concatenate(
        [features[:, v, :] for v in range(n_views)], axis=0)        # [Nc, D]
    nc = n_views * bsz

    if contrast_mode == 'one':
        na, anchor_count = bsz, 1          # anchors = first bsz contrast rows
    elif contrast_mode == 'all':
        na, anchor_count = nc, contrast_count
    else:
        raise ValueError('Unknown mode: {}'.format(contrast_mode))

    # ---- tile / padding geometry -------------------------------------------
    if block_m is None:
        # 128 is safe for v7x's 64 MiB VMEM; on v6e (128 MiB) block_m=256 is a
        # reasonable override for large Na.
        block_m = max(16, min(128, int(pl.next_power_of_2(na))))
    block_m = _round_up(block_m, 16)            # bf16 sublane-packing alignment
    na_pad = _round_up(na, block_m)
    na_tiles = na_pad // block_m
    block_c = max(128, min(_round_up(block_c, 128), _round_up(nc, 128)))
    nc_pad = _round_up(nc, block_c)
    n_chunks = nc_pad // block_c
    d_pad = _round_up(dim, 128)                 # lane-dense feature dim

    cf16 = contrast_feature.astype(jnp.bfloat16)
    # Anchor rows streamed per tile; contrast streamed pre-transposed [D, Nc]
    # (wrapper-side layout plumbing only, done once).
    anchor = jnp.zeros((na_pad, d_pad), jnp.bfloat16).at[:na, :dim].set(cf16[:na])
    ct = jnp.zeros((d_pad, nc_pad), jnp.bfloat16).at[:dim, :nc].set(cf16.T)

    # Per-anchor positive-pair counts (mask.sum(1) after self-exclusion),
    # precomputed from the small per-sample structure.
    if mask is None:
        if labels is None:
            ids = jnp.arange(bsz, dtype=jnp.float32)            # SimCLR: eye
        else:
            labels = jnp.asarray(labels).reshape(-1)
            if labels.shape[0] != bsz:
                raise ValueError('Num of labels does not match num of features')
            ids = labels.astype(jnp.float32)
        same = (ids[:, None] == ids[None, :])
        per_sample = (contrast_count *
                      jnp.sum(same, axis=1).astype(jnp.float32) - 1.0)
    else:
        base = jnp.asarray(mask).astype(jnp.float32)
        per_sample = (contrast_count * jnp.sum(base, axis=1)
                      - jnp.diagonal(base))
    pos_cnt = jnp.tile(per_sample, anchor_count)[:na]
    cnt = jnp.zeros((na_pad, 1), jnp.float32).at[:na, 0].set(pos_cnt)

    common_specs = [
        pl.BlockSpec((block_m, d_pad), lambda i, p, c: (i, 0)),   # anchors
        pl.BlockSpec((d_pad, block_c), lambda i, p, c: (0, c)),   # contrast^T
    ]

    if mask is None:
        # Positive mask rebuilt in-kernel from a per-anchor label column and a
        # per-contrast label row (no [Na, Nc] mask in HBM at all).
        anchor_ids = jnp.tile(ids, anchor_count)[:na]
        contrast_ids = jnp.tile(ids, contrast_count)
        lab_a = jnp.zeros((na_pad, 1), jnp.float32).at[:na, 0].set(anchor_ids)
        lab_c = jnp.full((1, nc_pad), -1.0, jnp.float32).at[0, :nc].set(
            contrast_ids)
        operands = (anchor, ct, lab_a, lab_c, cnt)
        in_specs = common_specs + [
            pl.BlockSpec((block_m, 1), lambda i, p, c: (i, 0)),
            pl.BlockSpec((1, block_c), lambda i, p, c: (0, c)),
            pl.BlockSpec((block_m, 1), lambda i, p, c: (i, 0)),
        ]
        use_labels = True
    else:
        # Explicit-mask path: stream the tiled mask as bf16 (half the HBM bytes
        # of f32); only fetch the real chunks during phase 1 (index (i, p*c)).
        big = jnp.tile(jnp.asarray(mask).astype(jnp.bfloat16),
                       (anchor_count, contrast_count))               # [na, nc]
        big = jnp.zeros((na_pad, nc_pad), jnp.bfloat16).at[:na, :nc].set(big)
        operands = (anchor, ct, big, cnt)
        in_specs = common_specs + [
            pl.BlockSpec((block_m, block_c), lambda i, p, c: (i, p * c)),
            pl.BlockSpec((block_m, 1), lambda i, p, c: (i, 0)),
        ]
        use_labels = False

    kernel = functools.partial(
        _supcon_kernel, use_labels=use_labels,
        temperature=float(temperature),
        base_temperature=float(base_temperature),
        num_anchors=na, num_contrast=nc, block_m=block_m, block_c=block_c)

    per_tile = pl.pallas_call(
        kernel,
        out_shape=jax.ShapeDtypeStruct((na_tiles, 1, 128), jnp.float32),
        grid_spec=pltpu.PrefetchScalarGridSpec(
            num_scalar_prefetch=0,
            grid=(na_tiles, 2, n_chunks),
            in_specs=in_specs,
            out_specs=pl.BlockSpec((1, 1, 128), lambda i, p, c: (i, 0, 0)),
            scratch_shapes=[pltpu.VMEM((block_m, 1), jnp.float32)] * 4,
        ),
        compiler_params=pltpu.CompilerParams(
            dimension_semantics=("parallel", "arbitrary", "arbitrary"),
            vmem_limit_bytes=32 * 1024 * 1024),
    )(*operands)

    # loss.view(anchor_count, batch_size).mean() == mean over all Na anchors.
    return jnp.sum(per_tile[:, 0, 0]) / jnp.float32(na)


if __name__ == "__main__":
    key = jax.random.PRNGKey(0)
    k1, k2 = jax.random.split(key)

    # Unsupervised (SimCLR-degenerate) path: bsz=4, n_views=2, hidden=32.
    feats = jax.random.normal(k1, (4, 2, 32), dtype=jnp.float32)
    feats = feats / jnp.linalg.norm(feats, axis=-1, keepdims=True)
    loss_unsup = supcon_loss(feats)
    jax.block_until_ready(loss_unsup)

    # Supervised path (labels): block_m=16 -> 2 anchor tiles, exercising the
    # multi-tile grid, the 2-phase chunk axis and per-tile partial-sum output.
    feats2 = jax.random.normal(k2, (16, 2, 32), dtype=jnp.float32)
    feats2 = feats2 / jnp.linalg.norm(feats2, axis=-1, keepdims=True)
    labels = jnp.arange(16, dtype=jnp.int32) % 4
    loss_sup = supcon_loss(feats2, labels=labels, block_m=16)
    jax.block_until_ready(loss_sup)

    # Explicit-mask path (streamed bf16 mask kernel variant).
    base_mask = (labels[:, None] == labels[None, :]).astype(jnp.float32)
    loss_mask = supcon_loss(feats2, mask=base_mask, block_m=16)
    jax.block_until_ready(loss_mask)

    assert bool(jnp.isfinite(loss_unsup))
    assert bool(jnp.isfinite(loss_sup))
    assert bool(jnp.isfinite(loss_mask))
    print("KERNEL_OK")
</pallas_src>

<mosaic_0001>
module attributes {stable_mosaic.version = 11 : i64} {
  func.func @_supcon_kernel(%arg0: i32, %arg1: i32, %arg2: i32, %arg3: memref<16x128xbf16, #tpu.memory_space<vmem>>, %arg4: memref<128x128xbf16, #tpu.memory_space<vmem>>, %arg5: memref<16x1xf32, #tpu.memory_space<vmem>>, %arg6: memref<1x128xf32, #tpu.memory_space<vmem>>, %arg7: memref<16x1xf32, #tpu.memory_space<vmem>>, %arg8: memref<1x1x128xf32, #tpu.memory_space<vmem>>, %arg9: memref<16x1xf32, #tpu.memory_space<vmem>>, %arg10: memref<16x1xf32, #tpu.memory_space<vmem>>, %arg11: memref<16x1xf32, #tpu.memory_space<vmem>>, %arg12: memref<16x1xf32, #tpu.memory_space<vmem>>) attributes {dimension_semantics = [#tpu.dimension_semantics<parallel>, #tpu.dimension_semantics<arbitrary>, #tpu.dimension_semantics<arbitrary>], iteration_bounds = array<i64: 1, 2, 1>, scalar_prefetch = 0 : i64, scratch_operands = 4 : i64, tpu.core_type = #tpu.core_type<tc>, window_params = [{transform_indices = @transform_0, window_bounds = array<i64: 16, 128>}, {transform_indices = @transform_1, window_bounds = array<i64: 128, 128>}, {transform_indices = @transform_2, window_bounds = array<i64: 16, 1>}, {transform_indices = @transform_3, window_bounds = array<i64: 1, 128>}, {transform_indices = @transform_4, window_bounds = array<i64: 16, 1>}, {transform_indices = @transform_5, window_bounds = array<i64: 1, 1, 128>}]} {
    %c0 = arith.constant 0 : index
    %c0_0 = arith.constant 0 : index
    %0 = vector.load %arg3[%c0, %c0_0] : memref<16x128xbf16, #tpu.memory_space<vmem>>, vector<16x128xbf16>
    %c0_1 = arith.constant 0 : index
    %c0_2 = arith.constant 0 : index
    %1 = vector.load %arg4[%c0_1, %c0_2] : memref<128x128xbf16, #tpu.memory_space<vmem>>, vector<128x128xbf16>
    %cst = arith.constant dense<0.000000e+00> : vector<16x128xf32>
    %2 = tpu.matmul %0, %1, %cst {dimension_numbers = #tpu.dot_dimension_numbers<[1], [0], [0], [1], [0, 0, 1, 1], [], []>} : vector<16x128xbf16>, vector<128x128xbf16>, vector<16x128xf32> -> vector<16x128xf32>
    %3 = tpu.iota {dimensions = array<i32: 1>} : vector<16x128xi32>
    %c128_i32 = arith.constant 128 : i32
    %4 = arith.muli %arg2, %c128_i32 : i32
    %5 = vector.broadcast %4 : i32 to vector<16x128xi32>
    %6 = arith.addi %3, %5 : vector<16x128xi32>
    %7 = tpu.iota {dimensions = array<i32: 0>} : vector<16x128xi32>
    %c16_i32 = arith.constant 16 : i32
    %8 = arith.muli %arg0, %c16_i32 : i32
    %9 = vector.broadcast %8 : i32 to vector<16x128xi32>
    %10 = arith.addi %7, %9 : vector<16x128xi32>
    %c8_i32 = arith.constant 8 : i32
    %11 = vector.broadcast %c8_i32 : i32 to vector<16x128xi32>
    %12 = arith.cmpi slt, %6, %11 : vector<16x128xi32>
    %c0_i32 = arith.constant 0 : i32
    %13 = arith.cmpi eq, %arg1, %c0_i32 : i32
    %c0_i32_3 = arith.constant 0 : i32
    %14 = arith.cmpi eq, %arg2, %c0_i32_3 : i32
    %15 = arith.andi %13, %14 : i1
    %16 = arith.extui %15 : i1 to i32
    %c0_i32_4 = arith.constant 0 : i32
    %17 = arith.cmpi ne, %16, %c0_i32_4 : i32
    scf.if %17 {
      %cst_11 = arith.constant 0xFF800000 : f32
      %29 = vector.broadcast %cst_11 : f32 to vector<16x1xf32>
      %c0_12 = arith.constant 0 : index
      %c0_13 = arith.constant 0 : index
      %30 = vector.load %arg9[%c0_12, %c0_13] : memref<16x1xf32, #tpu.memory_space<vmem>>, vector<16x1xf32>
      tpu.vector_store %arg9[%c0_12, %c0_13], %29 {strides = array<i32>} : memref<16x1xf32, #tpu.memory_space<vmem>>, vector<16x1xf32>,
      %cst_14 = arith.constant 0x7F800000 : f32
      %31 = vector.broadcast %cst_14 : f32 to vector<16x1xf32>
      %c0_15 = arith.constant 0 : index
      %c0_16 = arith.constant 0 : index
      %32 = vector.load %arg10[%c0_15, %c0_16] : memref<16x1xf32, #tpu.memory_space<vmem>>, vector<16x1xf32>
      tpu.vector_store %arg10[%c0_15, %c0_16], %31 {strides = array<i32>} : memref<16x1xf32, #tpu.memory_space<vmem>>, vector<16x1xf32>,
      %cst_17 = arith.constant 0.000000e+00 : f32
      %33 = vector.broadcast %cst_17 : f32 to vector<16x1xf32>
      %c0_18 = arith.constant 0 : index
      %c0_19 = arith.constant 0 : index
      %34 = vector.load %arg11[%c0_18, %c0_19] : memref<16x1xf32, #tpu.memory_space<vmem>>, vector<16x1xf32>
      tpu.vector_store %arg11[%c0_18, %c0_19], %33 {strides = array<i32>} : memref<16x1xf32, #tpu.memory_space<vmem>>, vector<16x1xf32>,
      %cst_20 = arith.constant 0.000000e+00 : f32
      %35 = vector.broadcast %cst_20 : f32 to vector<16x1xf32>
      %c0_21 = arith.constant 0 : index
      %c0_22 = arith.constant 0 : index
      %36 = vector.load %arg12[%c0_21, %c0_22] : memref<16x1xf32, #tpu.memory_space<vmem>>, vector<16x1xf32>
      tpu.vector_store %arg12[%c0_21, %c0_22], %35 {strides = array<i32>} : memref<16x1xf32, #tpu.memory_space<vmem>>, vector<16x1xf32>,
    } else {
    }
    %c0_i32_5 = arith.constant 0 : i32
    %18 = arith.cmpi eq, %arg1, %c0_i32_5 : i32
    %19 = arith.extui %18 : i1 to i32
    %c0_i32_6 = arith.constant 0 : i32
    %20 = arith.cmpi ne, %19, %c0_i32_6 : i32
    scf.if %20 {
      %c0_11 = arith.constant 0 : index
      %c0_12 = arith.constant 0 : index
      %29 = vector.load %arg9[%c0_11, %c0_12] : memref<16x1xf32, #tpu.memory_space<vmem>>, vector<16x1xf32>
      %cst_13 = arith.constant 0xFF800000 : f32
      %30 = vector.broadcast %cst_13 : f32 to vector<16x128xf32>
      %31 = arith.select %12, %2, %30 : vector<16x128xi1>, vector<16x128xf32>
      %cst_14 = arith.constant dense<0xFF800000> : vector<16xf32>
      %32 = vector.multi_reduction <maximumf>, %31, %cst_14 [1] : vector<16x128xf32> to vector<16xf32>
      %33 = vector.shape_cast %32 : vector<16xf32> to vector<16x1xf32>
      %34 = arith.maximumf %29, %33 : vector<16x1xf32>
      %c0_15 = arith.constant 0 : index
      %c0_16 = arith.constant 0 : index
      %35 = vector.load %arg9[%c0_15, %c0_16] : memref<16x1xf32, #tpu.memory_space<vmem>>, vector<16x1xf32>
      tpu.vector_store %arg9[%c0_15, %c0_16], %34 {strides = array<i32>} : memref<16x1xf32, #tpu.memory_space<vmem>>, vector<16x1xf32>,
      %c0_17 = arith.constant 0 : index
      %c0_18 = arith.constant 0 : index
      %36 = vector.load %arg10[%c0_17, %c0_18] : memref<16x1xf32, #tpu.memory_space<vmem>>, vector<16x1xf32>
      %cst_19 = arith.constant 0x7F800000 : f32
      %37 = vector.broadcast %cst_19 : f32 to vector<16x128xf32>
      %38 = arith.select %12, %2, %37 : vector<16x128xi1>, vector<16x128xf32>
      %cst_20 = arith.constant dense<0x7F800000> : vector<16xf32>
      %39 = vector.multi_reduction <minimumf>, %38, %cst_20 [1] : vector<16x128xf32> to vector<16xf32>
      %40 = vector.shape_cast %39 : vector<16xf32> to vector<16x1xf32>
      %41 = arith.minimumf %36, %40 : vector<16x1xf32>
      %c0_21 = arith.constant 0 : index
      %c0_22 = arith.constant 0 : index
      %42 = vector.load %arg10[%c0_21, %c0_22] : memref<16x1xf32, #tpu.memory_space<vmem>>, vector<16x1xf32>
      tpu.vector_store %arg10[%c0_21, %c0_22], %41 {strides = array<i32>} : memref<16x1xf32, #tpu.memory_space<vmem>>, vector<16x1xf32>,
    } else {
    }
    %c1_i32 = arith.constant 1 : i32
    %21 = arith.cmpi eq, %arg1, %c1_i32 : i32
    %22 = arith.extui %21 : i1 to i32
    %c0_i32_7 = arith.constant 0 : i32
    %23 = arith.cmpi ne, %22, %c0_i32_7 : i32
    scf.if %23 {
      %c0_11 = arith.constant 0 : index
      %c0_12 = arith.constant 0 : index
      %29 = vector.load %arg9[%c0_11, %c0_12] : memref<16x1xf32, #tpu.memory_space<vmem>>, vector<16x1xf32>
      %c0_13 = arith.constant 0 : index
      %c0_14 = arith.constant 0 : index
      %30 = vector.load %arg10[%c0_13, %c0_14] : memref<16x1xf32, #tpu.memory_space<vmem>>, vector<16x1xf32>
      %31 = arith.subf %29, %30 : vector<16x1xf32>
      %cst_15 = arith.constant 1.000000e+00 : f32
      %32 = vector.broadcast %cst_15 : f32 to vector<16x1xf32>
      %33 = arith.divf %32, %31 : vector<16x1xf32>
      %c0_16 = arith.constant 0 : index
      %c0_17 = arith.constant 0 : index
      %34 = vector.load %arg10[%c0_16, %c0_17] : memref<16x1xf32, #tpu.memory_space<vmem>>, vector<16x1xf32>
      %35 = vector.broadcast %34 : vector<16x1xf32> to vector<16x128xf32>
      %36 = arith.subf %2, %35 : vector<16x128xf32>
      %37 = vector.broadcast %33 : vector<16x1xf32> to vector<16x128xf32>
      %38 = arith.mulf %36, %37 : vector<16x128xf32>
      %39 = arith.cmpi ne, %6, %10 : vector<16x128xi32>
      %40 = arith.andi %12, %39 : vector<16x128xi1>
      %c0_18 = arith.constant 0 : index
      %c0_19 = arith.constant 0 : index
      %41 = vector.load %arg11[%c0_18, %c0_19] : memref<16x1xf32, #tpu.memory_space<vmem>>, vector<16x1xf32>
      %42 = math.exp %38 : vector<16x128xf32>
      %cst_20 = arith.constant 0.000000e+00 : f32
      %43 = vector.broadcast %cst_20 : f32 to vector<16x128xf32>
      %44 = arith.select %40, %42, %43 : vector<16x128xi1>, vector<16x128xf32>
      %cst_21 = arith.constant dense<0.000000e+00> : vector<16xf32>
      %45 = vector.multi_reduction <add>, %44, %cst_21 [1] : vector<16x128xf32> to vector<16xf32>
      %46 = vector.shape_cast %45 : vector<16xf32> to vector<16x1xf32>
      %47 = arith.addf %41, %46 : vector<16x1xf32>
      %c0_22 = arith.constant 0 : index
      %c0_23 = arith.constant 0 : index
      %48 = vector.load %arg11[%c0_22, %c0_23] : memref<16x1xf32, #tpu.memory_space<vmem>>, vector<16x1xf32>
      tpu.vector_store %arg11[%c0_22, %c0_23], %47 {strides = array<i32>} : memref<16x1xf32, #tpu.memory_space<vmem>>, vector<16x1xf32>,
      %c0_24 = arith.constant 0 : index
      %c0_25 = arith.constant 0 : index
      %49 = vector.load %arg5[%c0_24, %c0_25] : memref<16x1xf32, #tpu.memory_space<vmem>>, vector<16x1xf32>
      %c0_26 = arith.constant 0 : index
      %c0_27 = arith.constant 0 : index
      %50 = vector.load %arg6[%c0_26, %c0_27] : memref<1x128xf32, #tpu.memory_space<vmem>>, vector<1x128xf32>
      %51 = vector.broadcast %49 : vector<16x1xf32> to vector<16x128xf32>
      %52 = vector.broadcast %50 : vector<1x128xf32> to vector<16x128xf32>
      %53 = arith.cmpf oeq, %51, %52 : vector<16x128xf32>
      %54 = arith.andi %40, %53 : vector<16x128xi1>
      %c0_28 = arith.constant 0 : index
      %c0_29 = arith.constant 0 : index
      %55 = vector.load %arg12[%c0_28, %c0_29] : memref<16x1xf32, #tpu.memory_space<vmem>>, vector<16x1xf32>
      %cst_30 = arith.constant 0.000000e+00 : f32
      %56 = vector.broadcast %cst_30 : f32 to vector<16x128xf32>
      %57 = arith.select %54, %38, %56 : vector<16x128xi1>, vector<16x128xf32>
      %cst_31 = arith.constant dense<0.000000e+00> : vector<16xf32>
      %58 = vector.multi_reduction <add>, %57, %cst_31 [1] : vector<16x128xf32> to vector<16xf32>
      %59 = vector.shape_cast %58 : vector<16xf32> to vector<16x1xf32>
      %60 = arith.addf %55, %59 : vector<16x1xf32>
      %c0_32 = arith.constant 0 : index
      %c0_33 = arith.constant 0 : index
      %61 = vector.load %arg12[%c0_32, %c0_33] : memref<16x1xf32, #tpu.memory_space<vmem>>, vector<16x1xf32>
      tpu.vector_store %arg12[%c0_32, %c0_33], %60 {strides = array<i32>} : memref<16x1xf32, #tpu.memory_space<vmem>>, vector<16x1xf32>,
    } else {
    }
    %c1_i32_8 = arith.constant 1 : i32
    %24 = arith.cmpi eq, %arg1, %c1_i32_8 : i32
    %c0_i32_9 = arith.constant 0 : i32
    %25 = arith.cmpi eq, %arg2, %c0_i32_9 : i32
    %26 = arith.andi %24, %25 : i1
    %27 = arith.extui %26 : i1 to i32
    %c0_i32_10 = arith.constant 0 : i32
    %28 = arith.cmpi ne, %27, %c0_i32_10 : i32
    scf.if %28 {
      %c0_11 = arith.constant 0 : index
      %c0_12 = arith.constant 0 : index
      %29 = vector.load %arg7[%c0_11, %c0_12] : memref<16x1xf32, #tpu.memory_space<vmem>>, vector<16x1xf32>
      %cst_13 = arith.constant 9.99999997E-7 : f32
      %30 = vector.broadcast %cst_13 : f32 to vector<16x1xf32>
      %31 = arith.cmpf olt, %29, %30 : vector<16x1xf32>
      %cst_14 = arith.constant 1.000000e+00 : f32
      %32 = vector.broadcast %cst_14 : f32 to vector<16x1xf32>
      %33 = arith.select %31, %32, %29 : vector<16x1xi1>, vector<16x1xf32>
      %c0_15 = arith.constant 0 : index
      %c0_16 = arith.constant 0 : index
      %34 = vector.load %arg11[%c0_15, %c0_16] : memref<16x1xf32, #tpu.memory_space<vmem>>, vector<16x1xf32>
      %35 = math.log %34 : vector<16x1xf32>
      %c0_17 = arith.constant 0 : index
      %c0_18 = arith.constant 0 : index
      %36 = vector.load %arg12[%c0_17, %c0_18] : memref<16x1xf32, #tpu.memory_space<vmem>>, vector<16x1xf32>
      %37 = arith.mulf %29, %35 : vector<16x1xf32>
      %38 = arith.subf %36, %37 : vector<16x1xf32>
      %39 = arith.divf %38, %33 : vector<16x1xf32>
      %cst_19 = arith.constant -1.000000e+00 : f32
      %40 = vector.broadcast %cst_19 : f32 to vector<16x1xf32>
      %41 = arith.mulf %40, %39 : vector<16x1xf32>
      %42 = tpu.iota {dimensions = array<i32: 0>} : vector<16x1xi32>
      %c16_i32_20 = arith.constant 16 : i32
      %43 = arith.muli %arg0, %c16_i32_20 : i32
      %44 = vector.broadcast %43 : i32 to vector<16x1xi32>
      %45 = arith.addi %42, %44 : vector<16x1xi32>
      %c8_i32_21 = arith.constant 8 : i32
      %46 = vector.broadcast %c8_i32_21 : i32 to vector<16x1xi32>
      %47 = arith.cmpi slt, %45, %46 : vector<16x1xi32>
      %cst_22 = arith.constant 0.000000e+00 : f32
      %48 = vector.broadcast %cst_22 : f32 to vector<16x1xf32>
      %49 = arith.select %47, %41, %48 : vector<16x1xi1>, vector<16x1xf32>
      %50 = vector.shape_cast %49 : vector<16x1xf32> to vector<1x16x1xf32>
      %cst_23 = arith.constant dense<0.000000e+00> : vector<1xf32>
      %51 = vector.multi_reduction <add>, %50, %cst_23 [1, 2] : vector<1x16x1xf32> to vector<1xf32>
      %52 = vector.shape_cast %51 : vector<1xf32> to vector<1x1x1xf32>
      %53 = vector.extract %52[0, 0, 0] : f32 from vector<1x1x1xf32>
      %54 = vector.broadcast %53 : f32 to vector<1x1x128xf32>
      %c0_24 = arith.constant 0 : index
      %c0_25 = arith.constant 0 : index
      %c0_26 = arith.constant 0 : index
      %55 = vector.load %arg8[%c0_24, %c0_25, %c0_26] : memref<1x1x128xf32, #tpu.memory_space<vmem>>, vector<1x1x128xf32>
      tpu.vector_store %arg8[%c0_24, %c0_25, %c0_26], %54 {strides = array<i32>} : memref<1x1x128xf32, #tpu.memory_space<vmem>>, vector<1x1x128xf32>,
    } else {
    }
    return
  }
  func.func @transform_0(%arg0: i32, %arg1: i32, %arg2: i32) -> (i32, i32) {
    %c0_i32 = arith.constant 0 : i32
    %c0_i32_0 = arith.constant 0 : i32
    return %arg0, %c0_i32 : i32, i32
  }
  func.func @transform_1(%arg0: i32, %arg1: i32, %arg2: i32) -> (i32, i32) {
    %c0_i32 = arith.constant 0 : i32
    %c0_i32_0 = arith.constant 0 : i32
    return %c0_i32, %arg2 : i32, i32
  }
  func.func @transform_2(%arg0: i32, %arg1: i32, %arg2: i32) -> (i32, i32) {
    %c0_i32 = arith.constant 0 : i32
    %c0_i32_0 = arith.constant 0 : i32
    return %arg0, %c0_i32 : i32, i32
  }
  func.func @transform_3(%arg0: i32, %arg1: i32, %arg2: i32) -> (i32, i32) {
    %c0_i32 = arith.constant 0 : i32
    %c0_i32_0 = arith.constant 0 : i32
    return %c0_i32, %arg2 : i32, i32
  }
  func.func @transform_4(%arg0: i32, %arg1: i32, %arg2: i32) -> (i32, i32) {
    %c0_i32 = arith.constant 0 : i32
    %c0_i32_0 = arith.constant 0 : i32
    return %arg0, %c0_i32 : i32, i32
  }
  func.func @transform_5(%arg0: i32, %arg1: i32, %arg2: i32) -> (i32, i32, i32) {
    %c0_i32 = arith.constant 0 : i32
    %c0_i32_0 = arith.constant 0 : i32
    %c0_i32_1 = arith.constant 0 : i32
    return %arg0, %c0_i32, %c0_i32_0 : i32, i32, i32
  }
}

</mosaic_0001>

<bundles_post_ra>
// kernel: tpu_custom_call.1
= control target key start
LH: loop header
LB: loop body
LE: loop exit
PB: predicated region body
PF: predicated region fallthrough
CT: control target
= control target key end

     0   :  { %10 = vsyncpa [#allocation7], 0  ;;  %s1129_s0 = inlined_call_operand.vmem [shape: bf16[16,128], index: 0, kind: input, shape index: {}]   ;;  %s1130_s1 = inlined_call_operand.hbm [shape: bf16[128,128], index: 1, kind: input, shape index: {}]   ;;  %s1131_s2 = inlined_call_operand.vmem [shape: f32[16,1], index: 2, kind: input, shape index: {}]   ;;  %s1132_s3 = inlined_call_operand.vmem [shape: f32[1,128], index: 3, kind: input, shape index: {}]   ;;  %s1133_s4 = inlined_call_operand.vmem [shape: f32[16,1], index: 4, kind: input, shape index: {}]   ;;  %s1134_s5 = inlined_call_operand.hbm [shape: f32[1,1,128], index: 5, kind: output, shape index: {}]  }
   0x1   :  { %11 = vsyncpa [#allocation8], 0  ;;  %s1004_s18 = smov 0   ;;  %s1006_s19 = smov 0  }
   0x2   :  { %s1008_s20 = smov 0  }
   0x3 LB: > { %s749_s21 = sadd.s32 4294967295, %s962_s20   ;;  %s32_s22 = sadd.s32 1, %s958_s19  ;;  %s962_s20 = sphi %s1008_s20, %s17_s20   ;;  %s958_s19 = sphi %s1006_s19, %s1139_s19   ;;  %s954_s18 = sphi %s1004_s18, %s1138_s18  }
   0x4   : > { %p34_p0 = scmp.ge.s32.totalorder %s32_s22, 2  ;;  %p750_p1 = scmp.ge.s32.totalorder %s962_s20, 1 }
   0x5   : > { %p197_p2 = scmp.lt.s32.totalorder %s962_s20, 3  ;;  %p1031_p4 = scmp.eq.s32.totalorder %s749_s21, 0 }
   0x6   : > { %s1141_s22 = smov (%p34_p0, %s32_s22), 0  ;;  %s964_s25 = smov [#allocation6]  }
   0x7   : > { %p1025_p3 = pnand %p750_p1, %p197_p2  ;;  %s220_s26 = sshll.u32 %s964_s25, 4  ;;  %s221_s26 = int_to_ptr.vmem [resolvable:$true] %s220_s26 }
   0x8   : > { %s893_s27 = scalar_lea.vmem %s221_s26, 1024  ;;  %p901_p11 = scmp.lt.s32.totalorder %s221_s26, %s221_s26 }
   0x9   : > { %p817_p5 = pneg %p1025_p3  ;;  %p894_p8 = scmp.ne.s32.totalorder %s221_s26, %s893_s27 }
   0xa   : > { %p902_p12 = scmp.lt.s32.totalorder %s893_s27, %s893_s27 }
   0xb   : > { %p818_p6 = pnand %p1031_p4, %p817_p5 }
   0xc   : > { %p903_p13 = por %p902_p12, %p901_p11 }
   0xd   : > { %p884_p7 = pneg %p818_p6 }
   0xf   : > { %p896_p9 = pnand %p894_p8, %p884_p7 }
  0x11   : > { %p897_p10 = pneg %p896_p9 }
  0x13   : > { %p904_p0 = pnand %p903_p13, %p897_p10 }
  0x15   : > { %907 = shalt.err (!%p904_p0)
}
  0x16   : > { %s965_s28 = smov 64   ;;  %s966_s29 = smov 4  }
  0x17   : > { %820 = dma.hbm_to_vmem [thread:$0]  (!%p818_p6), %s1130_s1, 1024, %s221_s26, [#allocation7], %s965_s28, %s965_s28, %s966_s29  }
  0x18   : > { %260 = sbr.rel (%p1025_p3) target bundleno = 975 (0x3cf), region = 40 }
  0x1d   : > { %945 = dma.done.wait (%p1031_p4), [#allocation7], 1024  }
  0x1e   : > { %947 = vsyncadd (%p1031_p4), [#allocation7], 4294966272  ;;  %v967_v0 = vmov 0.0   ;;  %vm968_vm0 = vmmov 0   ;;  %v859_v1 = vld [vmem:[#allocation6 + $0x38] sm:$0xff]   ;;  %v860_v2 = vld [vmem:[#allocation6 + $0x30] sm:$0xff]   ;;  %v431_v10 = vlaneseq }
  0x1f   : > { %787 = vmatprep.subr.bf16.mxu0 %v967_v0  ;;  %803 = vmatprep.mubr.msk.bf16.mxu0 %vm968_vm0, %v967_v0  ;;  %v861_v3 = vld [vmem:[#allocation6 + $0x28] sm:$0xff]   ;;  %v862_v4 = vld [vmem:[#allocation6 + $0x20] sm:$0xff]   ;;  %v863_v5 = vld [vmem:[#allocation6 + $0x18] sm:$0xff]   ;;  %p444_p1 = scmp.eq.s32.totalorder %s954_s18, 0 }
  0x20   : > { %788 = vmatpush3.bf16.msra.mxu0 %v859_v1  ;;  %v864_v6 = vld [vmem:[#allocation6 + $0x10] sm:$0xff]   ;;  %v865_v7 = vld [vmem:[#allocation6 + $0x8] sm:$0xff]   ;;  %v866_v8 = vld [vmem:[#allocation6] sm:$0xff]   ;;  %v1051_v11 = vand.u32 127, %v431_v10  ;;  %v1053_v12 = vshrl.u32 %v431_v10, 7  ;;  %vm450_vm2 = vcmask (%p444_p1), 7168  }
  0x21   : > { %789 = vmatprep.subr.bf16.mxu0 %v967_v0  ;;  %v867_v9 = vld [vmem:[%s1129_s0] sm:$0xff]   ;;  %v969_v18 = vmov (%p444_p1), -inf   ;;  %v970_v19 = vmov (%p444_p1), inf   ;;  %v971_v20 = vmov (%p444_p1), 0.0  }
  0x22   : > { %v1056_v13 = vadd.s32 8, %v1053_v12  ;;  %vm443_vm1 = vcmp.lt.s32.totalorder %v1051_v11, 8  ;;  %451 = vst.msk [vmem:[#allocation2] sm:$0xff] (%p444_p1), %vm450_vm2, %v969_v18  ;;  %452 = vst.msk [vmem:[#allocation2 + $0x8] sm:$0xff] (%p444_p1), %vm450_vm2, %v969_v18 }
  0x23   : > { %453 = vst.msk [vmem:[#allocation3] sm:$0xff] (%p444_p1), %vm450_vm2, %v970_v19  ;;  %454 = vst.msk [vmem:[#allocation3 + $0x8] sm:$0xff] (%p444_p1), %vm450_vm2, %v970_v19 }
  0x24   : > { %790 = vmatpush3.bf16.msra.mxu0 %v860_v2  ;;  %455 = vst.msk [vmem:[#allocation4] sm:$0xff] (%p444_p1), %vm450_vm2, %v971_v20  ;;  %456 = vst.msk [vmem:[#allocation4 + $0x8] sm:$0xff] (%p444_p1), %vm450_vm2, %v971_v20 }
  0x25   : > { %791 = vmatprep.subr.bf16.mxu0 %v967_v0  ;;  %457 = vst.msk [vmem:[#allocation5] sm:$0xff] (%p444_p1), %vm450_vm2, %v971_v20  ;;  %458 = vst.msk [vmem:[#allocation5 + $0x8] sm:$0xff] (%p444_p1), %vm450_vm2, %v971_v20 }
  0x28   : > { %792 = vmatpush3.bf16.msra.mxu0 %v861_v3 }
  0x29   : > { %793 = vmatprep.subr.bf16.mxu0 %v967_v0 }
  0x2c   : > { %794 = vmatpush3.bf16.msra.mxu0 %v862_v4 }
  0x2d   : > { %795 = vmatprep.subr.bf16.mxu0 %v967_v0 }
  0x30   : > { %796 = vmatpush3.bf16.msra.mxu0 %v863_v5 }
  0x31   : > { %797 = vmatprep.subr.bf16.mxu0 %v967_v0 }
  0x34   : > { %798 = vmatpush3.bf16.msra.mxu0 %v864_v6 }
  0x35   : > { %799 = vmatprep.subr.bf16.mxu0 %v967_v0 }
  0x38   : > { %800 = vmatpush3.bf16.msra.mxu0 %v865_v7 }
  0x39   : > { %801 = vmatprep.subr.bf16.mxu0 %v967_v0 }
  0x3c   : > { %802 = vmatpush3.bf16.msra.mxu0 %v866_v8 }
  0x3f   : > { %804 = vmatmul.mubr.bf16.vlgmr.msra.gmra.mxu0 %v867_v9 }
  0xff   : > { %v1060_v14 = vpop.f32.mrf.mxu0 }
 0x101   : > { %v805_v15 = vpop.f32.mrf.mxu0  ;;  %449 = sbr.rel (!%p444_p1) target bundleno = 262 (0x106), region = 48 }
 0x103   : > { %v1062_v16 = vpop.f32.mrf.mxu0 }
 0x105   : > { %v806_v17 = vpop.f32.mrf.mxu0 }
 0x106 PF: > { %p768_p2 = scmp.ne.s32.totalorder %s954_s18, 0 }
 0x108   : > { %461 = sbr.rel (%p768_p2) target bundleno = 415 (0x19f), region = 52 }
 0x10d   : > { %v477_v21 = vsel %vm443_vm1, %v1060_v14, inf  ;;  %v464_v22 = vsel %vm443_vm1, %v1060_v14, -inf  ;;  %v478_v23 = vsel %vm443_vm1, %v1062_v16, inf  ;;  %v465_v24 = vsel %vm443_vm1, %v1062_v16, -inf  ;;  %v475_v25 = vld [vmem:[#allocation3] sm:$0xff]  ;;  %v462_v26 = vld [vmem:[#allocation2] sm:$0xff] }
 0x10e   : > { %479 = vmin.xlane.f32.xlu1 %v477_v21  ;;  %466 = vmax.xlane.f32.xlu0 %v464_v22  ;;  %vm472_vm3 = vcmask 7168   ;;  %v476_v31 = vld [vmem:[#allocation3 + $0x8] sm:$0xff]  ;;  %v463_v32 = vld [vmem:[#allocation2 + $0x8] sm:$0xff] }
 0x112   : > { %481 = vmin.xlane.f32.xlu1 %v478_v23  ;;  %468 = vmax.xlane.f32.xlu0 %v465_v24 }
 0x197   : > { %v480_v27 = vpop.xlane.xlu1 %479  ;;  %v467_v28 = vpop.xlane.xlu0 %466 }
 0x198   : > { %v483_v29 = vmin.f32 %v475_v25, %v480_v27  ;;  %v470_v30 = vmax.f32 %v462_v26, %v467_v28 }
 0x19a   : > { %485 = vst.msk [vmem:[#allocation3] sm:$0xff] %vm472_vm3, %v483_v29  ;;  %473 = vst.msk [vmem:[#allocation2] sm:$0xff] %vm472_vm3, %v470_v30 }
 0x19b   : > { %v482_v33 = vpop.xlane.xlu1 %481  ;;  %v469_v34 = vpop.xlane.xlu0 %468 }
 0x19c   : > { %v484_v35 = vmin.f32 %v476_v31, %v482_v33  ;;  %v471_v36 = vmax.f32 %v463_v32, %v469_v34 }
 0x19e   : > { %486 = vst.msk [vmem:[#allocation3 + $0x8] sm:$0xff] %vm472_vm3, %v484_v35  ;;  %474 = vst.msk [vmem:[#allocation2 + $0x8] sm:$0xff] %vm472_vm3, %v471_v36 }
 0x19f PF: > { %p487_p3 = scmp.eq.s32.totalorder %s954_s18, 1  ;;  %p769_p4 = scmp.ne.s32.totalorder %s954_s18, 1 }
 0x1a1   : > { %490 = sbr.rel (%p769_p4) target bundleno = 731 (0x2db), region = 56 }
 0x1a6   : > { %v493_v37 = vld [vmem:[#allocation3] sm:$0xff]  ;;  %v491_v38 = vld [vmem:[#allocation2] sm:$0xff]  ;;  %v494_v39 = vld [vmem:[#allocation3 + $0x8] sm:$0xff]  ;;  %v972_v40 = vmov 0   ;;  %vm525_vm4 = vcmp.ne.s32.totalorder %v1051_v11, %v1053_v12  ;;  %vm526_vm6 = vcmp.ne.s32.totalorder %v1051_v11, %v1056_v13  ;;  %vm543_vm12 = vcmask 7168  }
 0x1a7   : > { %868 = vset.pattern.permute.xlu0 %v972_v40  ;;  %v495_v41 = vsub.f32 %v491_v38, %v493_v37  ;;  %v492_v42 = vld [vmem:[#allocation2 + $0x8] sm:$0xff]  ;;  %869 = vset.pattern.permute.xlu1 %v972_v40  ;;  %v546_v44 = vld [vmem:[%s1131_s2] sm:$0xff]  ;;  %vm527_vm5 = vmand %vm443_vm1, %vm525_vm4 }
 0x1a8   : > { %503 = vperm.xlu0 %868, %v493_v37   ;;  %v496_v43 = vsub.f32 %v492_v42, %v494_v39  ;;  %v547_v47 = vld [vmem:[%s1131_s2 + $0x8] sm:$0xff]  ;;  %v770_v58 = vld [vmem:[%s1132_s3] ss:$0 sm:$0xff]  ;;  %vm528_vm9 = vmand %vm443_vm1, %vm526_vm6 }
 0x1a9   : > { %870 = vrcp.f32 %v495_v41  ;;  %v529_v3 = vld [vmem:[#allocation4] sm:$0xff]  ;;  %v569_v6 = vld [vmem:[#allocation5] sm:$0xff]  ;;  %v530_v7 = vld [vmem:[#allocation4 + $0x8] sm:$0xff] }
 0x1aa   : > { %872 = vrcp.f32 %v496_v43  ;;  %v570_v12 = vld [vmem:[#allocation5 + $0x8] sm:$0xff] }
 0x1ac   : > { %508 = vperm.xlu0 %868, %v494_v39  }
 0x1b0   : > { %551 = vperm.xlu0 %868, %v546_v44  }
 0x1b6   : > { %v871_v45 = vpop.eup %870 }
 0x1b7   : > { %515 = vperm.xlu1 %869, %v871_v45   ;;  %v873_v46 = vpop.eup %872 }
 0x1bb   : > { %520 = vperm.xlu1 %869, %v873_v46  }
 0x1bf   : > { %556 = vperm.xlu1 %869, %v547_v47  }
 0x223   : > { %v504_v48 = vpop.permute.xlu0 %503 }
 0x224   : > { %v511_v49 = vsub.f32 %v1060_v14, %v504_v48 }
 0x227   : > { %v509_v52 = vpop.permute.xlu0 %508 }
 0x228   : > { %v512_v53 = vsub.f32 %v1062_v16, %v509_v52 }
 0x22b   : > { %v552_v59 = vpop.permute.xlu0 %551 }
 0x22c   : > { %vm565_vm7 = vcmp.eq.f32.partialorder %v552_v59, %v770_v58 }
 0x22d   : > { %vm567_vm10 = vmand %vm527_vm5, %vm565_vm7 }
 0x232   : > { %v516_v50 = vpop.permute.xlu1 %515 }
 0x233   : > { %v523_v51 = vmul.f32 %v516_v50, %v511_v49 }
 0x235   : > { %v531_v54 = vmul.f32 1.442695, %v523_v51  ;;  %v571_v0 = vsel %vm567_vm10, %v523_v51, 0.0 }
 0x236   : > { %v521_v55 = vpop.permute.xlu1 %520 }
 0x237   : > { %874 = vpow2.f32 %v531_v54  ;;  %v524_v56 = vmul.f32 %v521_v55, %v512_v53 }
 0x239   : > { %v533_v57 = vmul.f32 1.442695, %v524_v56 }
 0x23a   : > { %v557_v61 = vpop.permute.xlu1 %556 }
 0x23b   : > { %876 = vpow2.f32 %v533_v57  ;;  %vm566_vm8 = vcmp.eq.f32.partialorder %v557_v61, %v770_v58 }
 0x23c   : > { %vm568_vm11 = vmand %vm528_vm9, %vm566_vm8 }
 0x23d   : > { %v572_v2 = vsel %vm568_vm11, %v524_v56, 0.0 }
 0x244   : > { %v875_v60 = vpop.eup %874 }
 0x245   : > { %v535_v62 = vsel %vm527_vm5, %v875_v60, 0.0 }
 0x246   : > { %537 = vadd.xlane.f32.xlu0 %v535_v62 }
 0x248   : > { %v877_v63 = vpop.eup %876 }
 0x249   : > { %v536_v1 = vsel %vm528_vm9, %v877_v63, 0.0 }
 0x24a   : > { %573 = vadd.xlane.f32.xlu0 %v571_v0  ;;  %539 = vadd.xlane.f32.xlu1 %v536_v1 }
 0x24e   : > { %575 = vadd.xlane.f32.xlu0 %v572_v2 }
 0x2cf   : > { %v538_v4 = vpop.xlane.xlu0 %537 }
 0x2d0   : > { %v541_v5 = vadd.f32 %v538_v4, %v529_v3 }
 0x2d2   : > { %544 = vst.msk [vmem:[#allocation4] sm:$0xff] %vm543_vm12, %v541_v5 }
 0x2d3   : > { %v574_v8 = vpop.xlane.xlu0 %573  ;;  %v540_v9 = vpop.xlane.xlu1 %539 }
 0x2d4   : > { %v577_v10 = vadd.f32 %v574_v8, %v569_v6  ;;  %v542_v11 = vadd.f32 %v540_v9, %v530_v7 }
 0x2d6   : > { %579 = vst.msk [vmem:[#allocation5] sm:$0xff] %vm543_vm12, %v577_v10  ;;  %545 = vst.msk [vmem:[#allocation4 + $0x8] sm:$0xff] %vm543_vm12, %v542_v11 }
 0x2d7   : > { %v576_v13 = vpop.xlane.xlu0 %575 }
 0x2d8   : > { %v578_v14 = vadd.f32 %v576_v13, %v570_v12 }
 0x2da   : > { %580 = vst.msk [vmem:[#allocation5 + $0x8] sm:$0xff] %vm543_vm12, %v578_v14 }
 0x2db PF: > { %584 = sbr.rel (!%p487_p3) target bundleno = 960 (0x3c0), region = 60  ;;  %v585_v15 = vld [vmem:[%s1133_s4] sm:$0xff] (%p487_p3)  ;;  %vm613_vm14 = vcmask (%p487_p3), 7168  }
 0x2dc   : > { %v591_v16 = vld [vmem:[#allocation4] sm:$0xff] (%p487_p3)  ;;  %vm587_vm13 = vcmp.lt.f32.partialorder (%p487_p3), %v585_v15, 1e-06 }
 0x2dd   : > { %878 = vlog2.f32 (%p487_p3), %v591_v16  ;;  %v589_v17 = vsel (%p487_p3), %vm587_vm13, 1.0, %v585_v15  ;;  %v597_v20 = vld [vmem:[#allocation5] sm:$0xff] (%p487_p3) }
 0x2de   : > { %880 = vrcp.f32 (%p487_p3), %v589_v17 }
 0x2ea   : > { %v879_v18 = vpop.eup %878 }
 0x2eb   : > { %v594_v19 = vmul.f32 0.6931472, %v879_v18  ;;  %v881_v22 = vpop.eup %880 }
 0x2ed   : > { %v599_v21 = vmul.f32 %v594_v19, %v585_v15 }
 0x2ef   : > { %v601_v23 = vsub.f32 %v597_v20, %v599_v21 }
 0x2f1   : > { %v604_v24 = vmul.f32 %v881_v22, %v601_v23 }
 0x2f3   : > { %v607_v25 = vmul.f32 -1.0, %v604_v24 }
 0x2f5   : > { %v614_v26 = vsel %vm613_vm14, %v607_v25, 0.0 }
 0x2f6   : > { %617 = vadd.xlane.f32.xlu0 %v614_v26 }
 0x37f   : > { %v618_v27 = vpop.xlane.xlu0 %617 }
 0x380   : > { %v619_v28 = vrot.slane %v618_v27, 4 }
 0x382   : > { %v620_v29 = vadd.f32 %v619_v28, %v618_v27 }
 0x384   : > { %v621_v30 = vrot.slane %v620_v29, 2 }
 0x386   : > { %v622_v31 = vadd.f32 %v621_v30, %v620_v29 }
 0x388   : > { %v623_v32 = vrot.slane %v622_v31, 1 }
 0x38a   : > { %v624_v33 = vadd.f32 %v623_v32, %v622_v31 }
 0x38c   : > { %807 = vpush %v624_v33 }
 0x3bd   : > { %s808_s17 = spop %807 }
 0x3be   : > { %v626_v34 = vstv %s808_s17 }
 0x3bf   : > { %627 = vst [vmem:[#allocation9] sm:$0x1] %v626_v34 }
 0x3c0 PF: > { %p1105_p5 = scmp.eq.s32.totalorder %s749_s21, 1  ;;  %s973_s23 = smov [#allocation9]  }
 0x3c1   : > { %s637_s24 = sshll.u32 %s973_s23, 4  ;;  %s638_s24 = int_to_ptr.vmem [resolvable:$true] %s637_s24 }
 0x3c2   : > { %s908_s25 = scalar_lea.vmem %s638_s24, 16  ;;  %s914_s26 = scalar_lea.vmem %s638_s24, 32 }
 0x3c3   : > { %p909_p6 = scmp.ne.s32.totalorder %s638_s24, %s908_s25  ;;  %p915_p9 = scmp.lt.s32.totalorder %s638_s24, %s638_s24 }
 0x3c4   : > { %p916_p10 = scmp.lt.s32.totalorder %s914_s26, %s908_s25 }
 0x3c5   : > { %p910_p7 = pnand %p909_p6, %p1105_p5 }
 0x3c6   : > { %p917_p11 = por %p916_p10, %p915_p9 }
 0x3c7   : > { %p911_p8 = pneg %p910_p7 }
 0x3c9   : > { %p918_p12 = pnand %p917_p11, %p911_p8 }
 0x3cb   : > { %921 = shalt.err (!%p918_p12)
}
 0x3cc   : > { %814 = dma.vmem_to_hbm [thread:$0]  (%p1105_p5), %s638_s24, 16, %s1134_s5, [#allocation8]  }
 0x3cd   : > { %949 = dma.done.wait (%p1105_p5), [#allocation8], 16  }
 0x3ce   : > { %951 = vsyncadd (%p1105_p5), [#allocation8], 4294967280 }
 0x3cf PF: > { %s17_s20 = sadd.s32 1, %s962_s20   ;;  %s1138_s18 = smov %s958_s19 }
 0x3d0   : > { %p14_p13 = scmp.ge.s32.totalorder %s17_s20, 4   ;;  %s1139_s19 = smov %s1141_s22 }
 0x3d2   :  { %16 = sbr.rel (!%p14_p13) target bundleno = 3 (0x3), region = 99 }
 0x3d7   :  { %650 = vsyncpa [#allocation7], 1 }
 0x3d8   :  { %652 = vsyncpa [#allocation7 + $0x1], 1 }
 0x3d9   :  { %653 = vsyncpa [#allocation8], 1 }
 0x3da   :  { %655 = vsyncpa [#allocation8 + $0x1], 1 }

</bundles_post_ra>
